<compile_context>
chip_gen: v5e
topology: v5e:2x2
jax: 0.10.0
libtpu: 0.0.40
codegen_flags: <defaults>
</compile_context>

<pallas_src>
import functools

import jax
import jax.numpy as jnp
from jax.experimental import pallas as pl
from jax.experimental.pallas import tpu as pltpu


# --------------------------------------------------------------------------- #
# Kernel body
# --------------------------------------------------------------------------- #
def _se_kernel(x_ref, w1_ref, b1_ref, w2_ref, b2_ref, o_ref, *, S, D):
    # x_ref / o_ref: (TB, S*D) lane-dense slab (size-1 middle dim squeezed away).
    SD = S * D
    xf = x_ref[...]                                            # (TB, SD) native dtype

    # ---- squeeze: mean over S channel groups, log-depth halving fold (f32) ----
    acc = xf.astype(jnp.float32)                               # (TB, SD)
    n = S
    while n % 2 == 0 and n > 1:                                # static Python unroll
        half = (n // 2) * D
        acc = acc[:, :half] + acc[:, half:]
        n //= 2
    z = acc[:, :D]
    for s in range(1, n):                                      # short tail only if S has odd factors
        z = z + acc[:, s * D:(s + 1) * D]
    z = z * (1.0 / S)                                          # (TB, D)

    # ---- excitation gate: relu(fc1) -> sigmoid(fc2) ---------------------------
    # Tiny matmuls (K=D, N=H and K=H, N=D): MXU sits in a free VLIW slot under a
    # memory-bound kernel, so no padding / reshaping effort is spent here.
    h = jnp.maximum(
        jnp.dot(z, w1_ref[...], preferred_element_type=jnp.float32) + b1_ref[...],
        0.0)                                                   # (TB, H)
    g = jax.nn.sigmoid(
        jnp.dot(h, w2_ref[...], preferred_element_type=jnp.float32) + b2_ref[...])
                                                               # (TB, D)

    # ---- broadcast the gate across the S groups by aligned doubling -----------
    # log2(S) concats at vreg-friendly widths instead of S-1 sub-vreg inserts.
    gate = g                                                   # (TB, D) f32
    width = D
    while width * 2 <= SD:
        gate = jnp.concatenate([gate, gate], axis=-1)
        width *= 2
    if width < SD:                                             # S not a power of two
        gate = jnp.concatenate([gate, gate[:, :SD - width]], axis=-1)

    # ---- scale: full-width lane-dense multiply + store ------------------------
    o_ref[...] = (xf * gate).astype(o_ref.dtype)


# --------------------------------------------------------------------------- #
# Block-size / VMEM policy
# --------------------------------------------------------------------------- #
def _looks_like_two_tc_chip():
    """Best-effort detection of a 2-TensorCore-per-chip part (v7x)."""
    try:
        kind = jax.devices()[0].device_kind.lower()
    except Exception:
        return True          # unknown -> be conservative about per-core work split
    return ("v7" in kind) or ("7x" in kind)


def _vmem_limit_bytes():
    """Scoped VMEM limit derived from physical VMEM (128 MiB v5e/v6e, 64 MiB/TC v7x)."""
    try:
        physical = int(pltpu.get_tpu_info().vmem_capacity_bytes)
    except Exception:
        physical = 64 << 20                      # v7x per-TC worst case
    # -> 64 MiB on 128-MiB chips (v5e/v6e), 48 MiB on v7x.
    return int(min(64 << 20, (physical * 3) // 4))


def _pick_block_b(B, row_bytes, SD, D, H, vmem_limit):
    """Batch rows per grid step.

    VMEM accounting per block row: 2x input + 2x output double-buffered blocks
    (native dtype) plus ~2 block-sized f32 temporaries inside the body (the
    replicated gate and the pre-store product) => ~6x row_bytes for f32 input.
    Weights/biases are a tiny fixed cost.
    """
    per_row = 4 * row_bytes + 2 * 4 * SD                        # I/O buffers + f32 temps
    fixed = 2 * 4 * (2 * D * H + H + D) + (1 << 20)             # weights (dbl-buffered) + headroom
    budget = max(vmem_limit - fixed, vmem_limit // 2)
    cap = max(1, budget // per_row)

    # DMA efficiency saturates around ~1 MiB tiles (measured ~85-86% of HBM
    # roofline by 1-4 MiB); cap the input block at 4 MiB so in-kernel value
    # live ranges stay modest while the DMA is already at roofline.
    cap = min(cap, max(1, (4 << 20) // row_bytes))
    cap = min(cap, B)

    # Give v7x's two TensorCores separate grid steps, but only when each half
    # is still a large DMA (>= 512 KiB).  On single-TC chips (v5e/v6e) the
    # split would only double per-step overhead, so skip it.
    if _looks_like_two_tc_chip() and B >= 2 and (pl.cdiv(B, 2) * row_bytes) >= (512 << 10):
        cap = min(cap, pl.cdiv(B, 2))
    return int(cap)


# --------------------------------------------------------------------------- #
# Wrapper
# --------------------------------------------------------------------------- #
def squeeze_excitation(x, w1, b1, w2, b2, *, block_b=None):
    """x: (B, S, D); w1: (D, H); b1: (1, H); w2: (H, D); b2: (1, D) -> (B, S, D)."""
    B, S, D = x.shape
    H = w1.shape[1]
    SD = S * D

    # Lane-dense view: one (1, S*D) row per batch element.  Free reshape in XLA.
    xv = x.reshape(B, 1, SD)

    vmem_limit = _vmem_limit_bytes()
    if block_b is None:
        block_b = _pick_block_b(B, SD * x.dtype.itemsize, SD, D, H, vmem_limit)
    block_b = int(max(1, min(block_b, B)))

    out = pl.pallas_call(
        functools.partial(_se_kernel, S=S, D=D),
        out_shape=jax.ShapeDtypeStruct((B, 1, SD), x.dtype),
        grid_spec=pltpu.PrefetchScalarGridSpec(
            num_scalar_prefetch=0,
            grid=(pl.cdiv(B, block_b),),            # ragged last block is fine: rows independent
            in_specs=[
                pl.BlockSpec((block_b, None, SD), lambda b: (b, 0, 0)),  # x slab (lane-dense)
                pl.BlockSpec((D, H), lambda b: (0, 0)),                  # W1 (in, out)
                pl.BlockSpec((1, H), lambda b: (0, 0)),                  # b1
                pl.BlockSpec((H, D), lambda b: (0, 0)),                  # W2 (in, out)
                pl.BlockSpec((1, D), lambda b: (0, 0)),                  # b2
            ],
            out_specs=pl.BlockSpec((block_b, None, SD), lambda b: (b, 0, 0)),
        ),
        compiler_params=pltpu.CompilerParams(
            dimension_semantics=("parallel",),
            vmem_limit_bytes=vmem_limit,
        ),
    )(xv, w1, b1, w2, b2)

    return out.reshape(B, S, D)


def reference(x, w1, b1, w2, b2):
    z = jnp.mean(x, axis=1)                                   # (B, D)
    h = jnp.maximum(z @ w1 + b1, 0.0)                         # (B, H)
    s = jax.nn.sigmoid(h @ w2 + b2)                           # (B, D)
    return x * s[:, None, :]


if __name__ == "__main__":
    # Small shapes consistent with the module: embed_dim=64, reduction=16 -> hidden=4
    B, S, D, reduction = 2, 8, 64, 16
    H = D // reduction

    key = jax.random.PRNGKey(0)
    kx, k1, k2, k3, k4 = jax.random.split(key, 5)

    x = jax.random.normal(kx, (B, S, D), dtype=jnp.float32)

    # Deterministic parameter init (nn.Linear-like uniform bounds), stored in
    # (in, out) orientation == PyTorch weight.T
    bound1 = 1.0 / (D ** 0.5)
    w1 = jax.random.uniform(k1, (D, H), minval=-bound1, maxval=bound1, dtype=jnp.float32)
    b1 = jax.random.uniform(k2, (1, H), minval=-bound1, maxval=bound1, dtype=jnp.float32)
    bound2 = 1.0 / (H ** 0.5)
    w2 = jax.random.uniform(k3, (H, D), minval=-bound2, maxval=bound2, dtype=jnp.float32)
    b2 = jax.random.uniform(k4, (1, D), minval=-bound2, maxval=bound2, dtype=jnp.float32)

    out = jax.block_until_ready(squeeze_excitation(x, w1, b1, w2, b2))
    ref = reference(x, w1, b1, w2, b2)
    assert out.shape == (B, S, D)
    assert jnp.allclose(out, ref, atol=1e-5, rtol=1e-5), "mismatch vs JAX reference"

    # Ragged-grid path: B not divisible by block_b (divisor-of-B requirement dropped).
    x3 = jax.random.normal(kx, (3, S, D), dtype=jnp.float32)
    out3 = jax.block_until_ready(squeeze_excitation(x3, w1, b1, w2, b2, block_b=2))
    ref3 = reference(x3, w1, b1, w2, b2)
    assert jnp.allclose(out3, ref3, atol=1e-5, rtol=1e-5), "ragged-grid mismatch"

    print("KERNEL_OK")
</pallas_src>

<mosaic_0001>
module attributes {stable_mosaic.version = 11 : i64} {
  func.func @_se_kernel(%arg0: i32, %arg1: memref<2x1x512xf32, #tpu.memory_space<vmem>>, %arg2: memref<64x4xf32, #tpu.memory_space<vmem>>, %arg3: memref<1x4xf32, #tpu.memory_space<vmem>>, %arg4: memref<4x64xf32, #tpu.memory_space<vmem>>, %arg5: memref<1x64xf32, #tpu.memory_space<vmem>>, %arg6: memref<2x1x512xf32, #tpu.memory_space<vmem>>) attributes {dimension_semantics = [#tpu.dimension_semantics<parallel>], iteration_bounds = array<i64: 1>, scalar_prefetch = 0 : i64, scratch_operands = 0 : i64, tpu.core_type = #tpu.core_type<tc>, window_params = [{transform_indices = @transform_0, window_bounds = array<i64: 2, 1, 512>}, {pipeline_mode = #tpu.pipeline_mode<synchronous>, transform_indices = @transform_1, window_bounds = array<i64: 64, 4>}, {pipeline_mode = #tpu.pipeline_mode<synchronous>, transform_indices = @transform_2, window_bounds = array<i64: 1, 4>}, {pipeline_mode = #tpu.pipeline_mode<synchronous>, transform_indices = @transform_3, window_bounds = array<i64: 4, 64>}, {pipeline_mode = #tpu.pipeline_mode<synchronous>, transform_indices = @transform_4, window_bounds = array<i64: 1, 64>}, {transform_indices = @transform_5, window_bounds = array<i64: 2, 1, 512>}]} {
    %c0 = arith.constant 0 : index
    %c0_0 = arith.constant 0 : index
    %c0_1 = arith.constant 0 : index
    %0 = vector.load %arg1[%c0, %c0_0, %c0_1] : memref<2x1x512xf32, #tpu.memory_space<vmem>>, vector<2x1x512xf32>
    %1 = vector.shape_cast %0 : vector<2x1x512xf32> to vector<2x512xf32>
    %2 = vector.extract_strided_slice %1 {offsets = [0, 0], sizes = [2, 256], strides = [1, 1]} : vector<2x512xf32> to vector<2x256xf32>
    %3 = vector.extract_strided_slice %1 {offsets = [0, 256], sizes = [2, 256], strides = [1, 1]} : vector<2x512xf32> to vector<2x256xf32>
    %4 = arith.addf %2, %3 : vector<2x256xf32>
    %5 = vector.extract_strided_slice %4 {offsets = [0, 0], sizes = [2, 128], strides = [1, 1]} : vector<2x256xf32> to vector<2x128xf32>
    %6 = vector.extract_strided_slice %4 {offsets = [0, 128], sizes = [2, 128], strides = [1, 1]} : vector<2x256xf32> to vector<2x128xf32>
    %7 = arith.addf %5, %6 : vector<2x128xf32>
    %8 = vector.extract_strided_slice %7 {offsets = [0, 0], sizes = [2, 64], strides = [1, 1]} : vector<2x128xf32> to vector<2x64xf32>
    %9 = vector.extract_strided_slice %7 {offsets = [0, 64], sizes = [2, 64], strides = [1, 1]} : vector<2x128xf32> to vector<2x64xf32>
    %10 = arith.addf %8, %9 : vector<2x64xf32>
    %cst = arith.constant 1.250000e-01 : f32
    %11 = vector.broadcast %cst : f32 to vector<2x64xf32>
    %12 = arith.mulf %10, %11 : vector<2x64xf32>
    %c0_2 = arith.constant 0 : index
    %c0_3 = arith.constant 0 : index
    %13 = vector.load %arg2[%c0_2, %c0_3] : memref<64x4xf32, #tpu.memory_space<vmem>>, vector<64x4xf32>
    %cst_4 = arith.constant dense<0.000000e+00> : vector<2x4xf32>
    %14 = tpu.matmul %12, %13, %cst_4 {dimension_numbers = #tpu.dot_dimension_numbers<[1], [0], [0], [1], [0, 0, 1, 1], [], []>} : vector<2x64xf32>, vector<64x4xf32>, vector<2x4xf32> -> vector<2x4xf32>
    %c0_5 = arith.constant 0 : index
    %c0_6 = arith.constant 0 : index
    %15 = vector.load %arg3[%c0_5, %c0_6] : memref<1x4xf32, #tpu.memory_space<vmem>>, vector<1x4xf32>
    %16 = vector.broadcast %15 : vector<1x4xf32> to vector<2x4xf32>
    %17 = arith.addf %14, %16 : vector<2x4xf32>
    %cst_7 = arith.constant 0.000000e+00 : f32
    %18 = vector.broadcast %cst_7 : f32 to vector<2x4xf32>
    %19 = arith.maximumf %17, %18 : vector<2x4xf32>
    %c0_8 = arith.constant 0 : index
    %c0_9 = arith.constant 0 : index
    %20 = vector.load %arg4[%c0_8, %c0_9] : memref<4x64xf32, #tpu.memory_space<vmem>>, vector<4x64xf32>
    %cst_10 = arith.constant dense<0.000000e+00> : vector<2x64xf32>
    %21 = tpu.matmul %19, %20, %cst_10 {dimension_numbers = #tpu.dot_dimension_numbers<[1], [0], [0], [1], [0, 0, 1, 1], [], []>} : vector<2x4xf32>, vector<4x64xf32>, vector<2x64xf32> -> vector<2x64xf32>
    %c0_11 = arith.constant 0 : index
    %c0_12 = arith.constant 0 : index
    %22 = vector.load %arg5[%c0_11, %c0_12] : memref<1x64xf32, #tpu.memory_space<vmem>>, vector<1x64xf32>
    %23 = vector.broadcast %22 : vector<1x64xf32> to vector<2x64xf32>
    %24 = arith.addf %21, %23 : vector<2x64xf32>
    %25 = arith.negf %24 : vector<2x64xf32>
    %26 = math.exp %25 : vector<2x64xf32>
    %cst_13 = arith.constant 1.000000e+00 : f32
    %27 = vector.broadcast %cst_13 : f32 to vector<2x64xf32>
    %28 = arith.addf %27, %26 : vector<2x64xf32>
    %29 = arith.divf %27, %28 : vector<2x64xf32>
    %30 = tpu.concatenate %29, %29 in 1 : vector<2x64xf32>, vector<2x64xf32> -> vector<2x128xf32>
    %31 = tpu.concatenate %30, %30 in 1 : vector<2x128xf32>, vector<2x128xf32> -> vector<2x256xf32>
    %32 = tpu.concatenate %31, %31 in 1 : vector<2x256xf32>, vector<2x256xf32> -> vector<2x512xf32>
    %33 = arith.mulf %1, %32 : vector<2x512xf32>
    %c0_14 = arith.constant 0 : index
    %c0_15 = arith.constant 0 : index
    %c0_16 = arith.constant 0 : index
    %34 = vector.load %arg6[%c0_14, %c0_15, %c0_16] : memref<2x1x512xf32, #tpu.memory_space<vmem>>, vector<2x1x512xf32>
    %35 = vector.shape_cast %34 : vector<2x1x512xf32> to vector<2x512xf32>
    %36 = vector.shape_cast %33 : vector<2x512xf32> to vector<2x1x512xf32>
    tpu.vector_store %arg6[%c0_14, %c0_15, %c0_16], %36 {strides = array<i32>} : memref<2x1x512xf32, #tpu.memory_space<vmem>>, vector<2x1x512xf32>,
    return
  }
  func.func @transform_0(%arg0: i32) -> (i32, i32, i32) {
    %c0_i32 = arith.constant 0 : i32
    %c0_i32_0 = arith.constant 0 : i32
    %c0_i32_1 = arith.constant 0 : i32
    return %arg0, %c0_i32, %c0_i32_0 : i32, i32, i32
  }
  func.func @transform_1(%arg0: i32) -> (i32, i32) {
    %c0_i32 = arith.constant 0 : i32
    %c0_i32_0 = arith.constant 0 : i32
    %c0_i32_1 = arith.constant 0 : i32
    return %c0_i32, %c0_i32_0 : i32, i32
  }
  func.func @transform_2(%arg0: i32) -> (i32, i32) {
    %c0_i32 = arith.constant 0 : i32
    %c0_i32_0 = arith.constant 0 : i32
    %c0_i32_1 = arith.constant 0 : i32
    return %c0_i32, %c0_i32_0 : i32, i32
  }
  func.func @transform_3(%arg0: i32) -> (i32, i32) {
    %c0_i32 = arith.constant 0 : i32
    %c0_i32_0 = arith.constant 0 : i32
    %c0_i32_1 = arith.constant 0 : i32
    return %c0_i32, %c0_i32_0 : i32, i32
  }
  func.func @transform_4(%arg0: i32) -> (i32, i32) {
    %c0_i32 = arith.constant 0 : i32
    %c0_i32_0 = arith.constant 0 : i32
    %c0_i32_1 = arith.constant 0 : i32
    return %c0_i32, %c0_i32_0 : i32, i32
  }
  func.func @transform_5(%arg0: i32) -> (i32, i32, i32) {
    %c0_i32 = arith.constant 0 : i32
    %c0_i32_0 = arith.constant 0 : i32
    %c0_i32_1 = arith.constant 0 : i32
    return %arg0, %c0_i32, %c0_i32_0 : i32, i32, i32
  }
}

</mosaic_0001>

<bundles_post_ra>
// kernel: tpu_custom_call.1
= control target key start
LH: loop header
LB: loop body
LE: loop exit
PB: predicated region body
PF: predicated region fallthrough
CT: control target
= control target key end

     0   :  { %s327_s0 = inlined_call_operand.vmem [shape: f32[2,1,512], index: 0, kind: input, shape index: {}]   ;;  %s328_s1 = inlined_call_operand.vmem [shape: f32[64,4], index: 1, kind: input, shape index: {}]   ;;  %s329_s2 = inlined_call_operand.vmem [shape: f32[1,4], index: 2, kind: input, shape index: {}]   ;;  %s330_s3 = inlined_call_operand.vmem [shape: f32[4,64], index: 3, kind: input, shape index: {}]   ;;  %s331_s4 = inlined_call_operand.vmem [shape: f32[1,64], index: 4, kind: input, shape index: {}]   ;;  %s332_s5 = inlined_call_operand.hbm [shape: f32[2,1,512], index: 5, kind: output, shape index: {}]  }
   0x1   :  { %v270_v0 = vld [vmem:[%s327_s0] sm:$0xf]  ;;  %v275_v1 = vld [vmem:[%s327_s0 + $0x4] sm:$0xf] }
   0x2   :  { %v25_v2 = vrot.slane %v270_v0, 2  ;;  %v26_v3 = vrot.slane %v275_v1, 2 }
   0x3   :  { %10 = vsyncpa [#allocation3], 0  ;;  %s234_s22 = smov 64   ;;  %v58_v10 = vld [vmem:[%s328_s1 + $0x38] sm:$0xff]  ;;  %v57_v11 = vld [vmem:[%s328_s1 + $0x30] sm:$0xff]  ;;  %vm69_vm0 = vcmask 523264   ;;  %v171_v48 = vlaneseq }
   0x4   :  { %v29_v4 = vadd.f32 %v25_v2, %v270_v0  ;;  %v30_v6 = vadd.f32 %v26_v3, %v275_v1  ;;  %80 = vmatpush.msra.mxu0 %v58_v10  ;;  %v56_v12 = vld [vmem:[%s328_s1 + $0x28] sm:$0xff]  ;;  %v55_v13 = vld [vmem:[%s328_s1 + $0x20] sm:$0xff]  ;;  %v54_v14 = vld [vmem:[%s328_s1 + $0x18] sm:$0xff]  ;;  %vm102_vm1 = vcmask 1043456   ;;  %vm98_vm2 = vcmask 31744   ;;  %s183_s19 = sshll.u32 %s332_s5, 4  ;;  %s184_s19 = int_to_ptr.hbm [resolvable:$true] %s183_s19 }
   0x5   :  { %v53_v15 = vld [vmem:[%s328_s1 + $0x10] sm:$0xff]  ;;  %v52_v16 = vld [vmem:[%s328_s1 + $0x8] sm:$0xff]  ;;  %v51_v17 = vld [vmem:[%s328_s1] sm:$0xff]  ;;  %vm154_vm7 = vcmask 1040384   ;;  %vm156_vm8 = vcmask 1042434   ;;  %vm158_vm9 = vcmask 1041408  }
   0x6   :  { %v33_v5 = vrot.slane %v29_v4, 1  ;;  %v34_v8 = vrot.slane %v30_v6, 1  ;;  %81 = vmatpush.msra.mxu0 %v57_v11  ;;  %v93_v25 = vld [vmem:[%s330_s3] sm:$0xf]  ;;  %vm160_vm10 = vcmask 1041409   ;;  %vm162_vm11 = vcmask 1043459  }
   0x7   :  { %196 = vmatpush.msk.msra.mxu1 %vm102_vm1, %v93_v25  ;;  %v202_v26 = vld [vmem:[%s329_s2] ss:$0 sm:$0xff]  ;;  %vm164_vm12 = vcmask 1042433   ;;  %s235_s2 = smov [#allocation2]   ;;  %vm173_vm13 = vcmp.lt.s32.totalorder %v171_v48, 512  ;;  %s236_s20 = smov 4  }
   0x8   :  { %v37_v7 = vadd.f32 %v33_v5, %v29_v4  ;;  %v38_v9 = vadd.f32 %v34_v8, %v30_v6  ;;  %82 = vmatpush.msra.mxu0 %v56_v12  ;;  %v203_v30 = vld [vmem:[%s331_s4] ss:$0 sm:$0xff]  ;;  %s181_s3 = sshll.u32 %s235_s2, 4  ;;  %s182_s3 = int_to_ptr.vmem [resolvable:$true] %s181_s3 }
   0xa   :  { %41 = vrot.lane.b32.xlu0 %v37_v7, %s234_s22  ;;  %83 = vmatpush.msra.mxu0 %v55_v13 }
   0xc   :  { %84 = vmatpush.msra.mxu0 %v54_v14 }
   0xe   :  { %85 = vmatpush.msra.mxu0 %v53_v15 }
  0x10   :  { %86 = vmatpush.msra.mxu0 %v52_v16 }
  0x12   :  { %43 = vrot.lane.b32.xlu0 %v38_v9, %s234_s22  ;;  %87 = vmatpush.msra.mxu0 %v51_v17 }
  0x7c   :  { %v42_v18 = vpop.permute.xlu0 %41 }
  0x7d   :  { %v47_v19 = vadd.f32 %v42_v18, %v37_v7 }
  0x7f   :  { %v49_v20 = vmul.f32 0.125, %v47_v19 }
  0x81   :  { %65 = vst [vmem:[#allocation1] ss:$9 sm:$0xff] %v49_v20 }
  0x84   :  { %v44_v21 = vpop.permute.xlu0 %43 }
  0x85   :  { %v48_v22 = vadd.f32 %v44_v21, %v38_v9 }
  0x87   :  { %v50_v23 = vmul.f32 0.125, %v48_v22 }
  0x89   :  { %67 = vst [vmem:[#allocation1 + $0x1] ss:$9 sm:$0xff] %v50_v23 }
  0x90   :  { %v68_v24 = vld [vmem:[#allocation1] sm:$0xff] }
  0x91   :  { %195 = vmatmul.msk.f32.vlgmr.msra.gmra.mxu0 %vm69_vm0, %v68_v24 }
 0x10e   :  { %v89_v27 = vpop.f32.mrf.mxu0 }
 0x10f   :  { %v90_v28 = vadd.f32 %v202_v26, %v89_v27 }
 0x111   :  { %v92_v29 = vmax.f32 %v90_v28, 0.0 }
 0x113   :  { %197 = vmatmul.msk.f32.vlgmr.msra.gmra.mxu1 %vm98_vm2, %v92_v29 }
 0x190   :  { %v123_v31 = vpop.f32.mrf.mxu1 }
 0x191   :  { %v124_v32 = vadd.f32 %v203_v30, %v123_v31 }
 0x193   :  { %v198_v33 = vmul.f32 -1.442695, %v124_v32 }
 0x195   :  { %204 = vpow2.f32 %v198_v33 }
 0x19b   :  { %v205_v34 = vpop.eup %204 }
 0x19c   :  { %v129_v35 = vadd.f32 1.0, %v205_v34 }
 0x19e   :  { %206 = vrcp.f32 %v129_v35  ;;  %v141_v39 = vand.u32 2147483648, %v129_v35  ;;  %v139_v41 = vand.u32 2147483647, %v129_v35  ;;  %vm135_vm4 = vweird.f32 %v129_v35 }
 0x1a0   :  { %v142_v43 = vor.u32 1.1754944e-38, %v141_v39  ;;  %vm140_vm6 = vcmp.eq.f32.partialorder %v139_v41, 8.507059e+37 }
 0x1a4   :  { %v207_v36 = vpop.eup %206 }
 0x1a5   :  { %v131_v37 = vmul.f32 %v207_v36, %v129_v35  ;;  %vm136_vm3 = vweird.f32 %v207_v36 }
 0x1a6   :  { %vm137_vm5 = vmor %vm135_vm4, %vm136_vm3 }
 0x1a7   :  { %v132_v38 = vsub.f32 1.0, %v131_v37 }
 0x1a9   :  { %v133_v40 = vmul.f32 %v207_v36, %v132_v38 }
 0x1ab   :  { %v134_v42 = vadd.f32 %v207_v36, %v133_v40 }
 0x1ad   :  { %v138_v44 = vsel %vm137_vm5, %v207_v36, %v134_v42 }
 0x1ae   :  { %v143_v45 = vsel %vm140_vm6, %v142_v43, %v138_v44 }
 0x1af   :  { %146 = vrot.lane.b32.xlu1 %v143_v45, %s234_s22 }
 0x221   :  { %v147_v46 = vpop.permute.xlu1 %146 }
 0x222   :  { %v149_v47 = vsel %vm69_vm0, %v143_v45, %v147_v46 }
 0x223   :  { %v151_v49 = vrot.slane %v149_v47, 7  ;;  %v152_v50 = vrot.slane %v149_v47, 6  ;;  %v153_v51 = vrot.slane %v149_v47, 5 }
 0x225   :  { %v155_v52 = vsel %vm154_vm7, %v149_v47, %v151_v49  ;;  %v157_v53 = vsel %vm156_vm8, %v152_v50, %v153_v51  ;;  %v161_v54 = vsel %vm160_vm10, %v149_v47, %v151_v49  ;;  %v163_v55 = vsel %vm162_vm11, %v152_v50, %v153_v51 }
 0x226   :  { %v159_v56 = vsel %vm158_vm9, %v155_v52, %v157_v53  ;;  %v165_v57 = vsel %vm164_vm12, %v161_v54, %v163_v55 }
 0x227   :  { %v166_v58 = vrot.slane %v165_v57, 1  ;;  %v169_v59 = vmul.f32 %v159_v56, %v270_v0 }
 0x229   :  { %v170_v60 = vmul.f32 %v166_v58, %v275_v1  ;;  %175 = vst.msk [vmem:[#allocation2] sm:$0xf] %vm173_vm13, %v169_v59 }
 0x22b   :  { %176 = vst.msk [vmem:[#allocation2 + $0x4] sm:$0xf] %vm173_vm13, %v170_v60 }
 0x22c   :  { %189 = dma.vmem_to_hbm [thread:$0]  %s182_s3, 128, %s184_s19, [#allocation3], %s234_s22, %s234_s22, %s236_s20  }
 0x22d   :  { %232 = dma.done.wait [#allocation3], 128  }
 0x22e   :  { %233 = vsyncadd [#allocation3], 4294967168 }
 0x22f   :  { %194 = vsyncpa [#allocation3], 1 }

</bundles_post_ra>
